<compile_context>
chip_gen: v7x
topology: tpu7x:2x2x1
jax: 0.10.0
libtpu: 0.0.40
codegen_flags: <defaults>
</compile_context>

<pallas_src>
import jax
import jax.numpy as jnp
from jax.experimental import pallas as pl
from jax.experimental.pallas import tpu as pltpu


LANE = 128          # vreg lane width; hidden width is padded/stacked to a multiple
MAX_TILE_B = 1024   # cap on the batch tile for very large evaluation batches


def _round_up(x, m):
    return ((x + m - 1) // m) * m


def _choose_tile_b(B):
    """Batch tile: single tile for tiny B, >=2 parallel steps (v7x megacore) otherwise,
    large tiles for big B to amortize per-grid-step overhead."""
    if B <= LANE:
        return B                      # single full-array tile, no masking
    if B <= 2 * LANE:
        return LANE                   # two tiles -> both v7x TensorCores busy
    return min(MAX_TILE_B, _round_up(pl.cdiv(B, 2), 256))


def soft_q_kernel(s_ref, a_ref, w1s_ref, w1a_ref, b1_ref, w2_ref, b2_ref,
                  w3_ref, b3_ref, o_ref):
    """One batch tile of the (possibly multi-critic) 3-layer critic.

    s_ref:(TB,S) a_ref:(TB,A)  w1s:(S,Ht) w1a:(A,Ht)  b1,b2:(1,Ht)  w2:(Ht,Ht)
    w3:(n_out,Ht)  b3:(n_out,) in SMEM.  o_ref:(n_out,TB) lane-dense Q output.
    Ht is a multiple of 128 (zero-padded / critic-stacked hidden width).
    """
    w1s = w1s_ref[...]
    w1a = w1a_ref[...]
    # Layer 1: concat([state, action]) fused as a split matmul (MXU, f32 accumulate).
    h1 = (jnp.dot(s_ref[...].astype(w1s.dtype), w1s,
                  preferred_element_type=jnp.float32)
          + jnp.dot(a_ref[...].astype(w1a.dtype), w1a,
                    preferred_element_type=jnp.float32)
          + b1_ref[...])
    h1 = jnp.maximum(h1, 0.0)

    # Layer 2: (TB,Ht) @ (Ht,Ht); block-diagonal w2 keeps stacked critics independent.
    w2 = w2_ref[...]
    h2 = jnp.dot(h1.astype(w2.dtype), w2,
                 preferred_element_type=jnp.float32) + b2_ref[...]
    h2 = jnp.maximum(h2, 0.0)

    # Layer 3 (Ht -> 1 per critic): VPU multiply + cross-lane reduce per output row,
    # stored lane-dense as an (n_out, TB) slab.
    w3 = w3_ref[...].astype(jnp.float32)
    n_out = o_ref.shape[0]
    rows = []
    for r in range(n_out):                       # n_out is tiny (1-2); unrolled at trace time
        rows.append(jnp.sum(h2 * w3[r:r + 1, :], axis=-1) + b3_ref[r])
    o_ref[...] = jnp.stack(rows, axis=0).astype(o_ref.dtype)


def soft_q_forward(state, action, kernel_params):
    """Pallas forward: state (B,S), action (B,A) -> (B, n_critics) f32.

    kernel_params come from prepare_params(); for a single critic the result is (B,1),
    matching the PyTorch module exactly.
    """
    w1s, w1a, b1, w2, b2, w3, b3 = kernel_params
    B, S = state.shape
    A = action.shape[1]
    Ht = w2.shape[0]
    n_out = w3.shape[0]

    # Feed inputs in the weight dtype (bf16 weights => bf16 input DMA); math stays f32.
    in_dtype = w1s.dtype
    state = state.astype(in_dtype)
    action = action.astype(in_dtype)

    tile_b = _choose_tile_b(B)
    grid = (pl.cdiv(B, tile_b),)         # ragged last tile handled by masked boundary DMA
    const2 = lambda i: (0, 0)            # weights/biases: fetched once, VMEM-resident

    q_rows = pl.pallas_call(
        soft_q_kernel,
        out_shape=jax.ShapeDtypeStruct((n_out, B), jnp.float32),
        grid_spec=pltpu.PrefetchScalarGridSpec(
            num_scalar_prefetch=0,
            grid=grid,
            in_specs=[
                pl.BlockSpec((tile_b, S), lambda i: (i, 0)),        # state tile
                pl.BlockSpec((tile_b, A), lambda i: (i, 0)),        # action tile
                pl.BlockSpec((S, Ht), const2),                      # w1_s
                pl.BlockSpec((A, Ht), const2),                      # w1_a
                pl.BlockSpec((1, Ht), const2),                      # b1
                pl.BlockSpec((Ht, Ht), const2),                     # w2 (block-diag if fused)
                pl.BlockSpec((1, Ht), const2),                      # b2
                pl.BlockSpec((n_out, Ht), const2),                  # w3 rows
                pl.BlockSpec(memory_space=pltpu.MemorySpace.SMEM),  # b3 scalars
            ],
            out_specs=pl.BlockSpec((n_out, tile_b), lambda i: (0, i)),  # lane-dense output
        ),
        compiler_params=pltpu.CompilerParams(
            dimension_semantics=("parallel",)),
    )(state, action, w1s, w1a, b1, w2, b2, w3, b3)

    return q_rows.T  # (B, n_out)


def init_params(key, state_dim, action_dim, hidden_dim=64):
    """PyTorch nn.Linear-style init (uniform +/- 1/sqrt(fan_in)), module layout:
    w1:(S+A,H) b1:(H,) w2:(H,H) b2:(H,) w3:(H,1) b3:(1,)  (weights transposed for x@W)."""
    S, A, H = state_dim, action_dim, hidden_dim
    ks = jax.random.split(key, 6)

    def unif(k, shape, fan_in):
        bound = 1.0 / float(fan_in) ** 0.5
        return jax.random.uniform(k, shape, jnp.float32, -bound, bound)

    in_dim = S + A
    w1 = unif(ks[0], (in_dim, H), in_dim)
    b1 = unif(ks[1], (H,), in_dim)
    w2 = unif(ks[2], (H, H), H)
    b2 = unif(ks[3], (H,), H)
    w3 = unif(ks[4], (H, 1), H)
    b3 = unif(ks[5], (1,), H)
    return (w1, b1, w2, b2, w3, b3)


def prepare_params(critics, state_dim, weight_dtype=jnp.float32):
    """Pack 1..N critics into the stacked, lane-dense kernel layout.

    Hidden features of all critics are concatenated and zero-padded to Ht (a multiple
    of 128); w2 is block-diagonal so critics stay independent; w3 is one row per critic
    (zero outside its block); b3 is an (N,) SMEM scalar vector. bf16 weight_dtype is
    fine on v5e/v6e/v7x (MXU is native bf16; biases/accumulation stay f32)."""
    n = len(critics)
    S = state_dim
    in_dim, H = critics[0][0].shape
    A = in_dim - S
    Ht = _round_up(n * H, LANE)

    w1s = jnp.zeros((S, Ht), jnp.float32)
    w1a = jnp.zeros((A, Ht), jnp.float32)
    b1 = jnp.zeros((1, Ht), jnp.float32)
    w2 = jnp.zeros((Ht, Ht), jnp.float32)
    b2 = jnp.zeros((1, Ht), jnp.float32)
    w3 = jnp.zeros((n, Ht), jnp.float32)
    b3 = jnp.zeros((n,), jnp.float32)

    for c, (w1_c, b1_c, w2_c, b2_c, w3_c, b3_c) in enumerate(critics):
        seg = slice(c * H, (c + 1) * H)
        w1s = w1s.at[:, seg].set(w1_c[:S, :])
        w1a = w1a.at[:, seg].set(w1_c[S:, :])
        b1 = b1.at[0, seg].set(b1_c)
        w2 = w2.at[seg, seg].set(w2_c)
        b2 = b2.at[0, seg].set(b2_c)
        w3 = w3.at[c, seg].set(w3_c[:, 0])
        b3 = b3.at[c].set(b3_c[0])

    return (w1s.astype(weight_dtype), w1a.astype(weight_dtype), b1,
            w2.astype(weight_dtype), b2,
            w3.astype(weight_dtype), b3)


def soft_q_reference(state, action, params):
    """Pure-JAX reference matching the PyTorch module exactly."""
    w1, b1, w2, b2, w3, b3 = params
    x = jnp.concatenate([state, action], axis=1)
    h1 = jnp.maximum(x @ w1 + b1, 0.0)
    h2 = jnp.maximum(h1 @ w2 + b2, 0.0)
    return h2 @ w3 + b3


if __name__ == "__main__":
    batch, state_dim, action_dim, hidden_dim = 2, 8, 4, 64

    key = jax.random.PRNGKey(0)
    k_state, k_action, k_p1, k_p2, k_big = jax.random.split(key, 5)

    state = jax.random.normal(k_state, (batch, state_dim), jnp.float32)
    action = jax.random.normal(k_action, (batch, action_dim), jnp.float32)

    params1 = init_params(k_p1, state_dim, action_dim, hidden_dim)
    params2 = init_params(k_p2, state_dim, action_dim, hidden_dim)

    # Single critic (exact semantics of the PyTorch module), small single-tile batch.
    kp1 = prepare_params([params1], state_dim)
    out = jax.block_until_ready(soft_q_forward(state, action, kp1))
    ref = soft_q_reference(state, action, params1)
    assert out.shape == (batch, 1), out.shape
    assert jnp.allclose(out, ref, atol=1e-4, rtol=1e-4), (out, ref)

    # Fused twin-critic call (SAC qf1/qf2 in ONE pallas_call, 128 lanes exactly full),
    # on a multi-tile ragged batch (no wrapper-side padding of the inputs).
    big_b = 300
    ks_b, ka_b = jax.random.split(k_big)
    state_b = jax.random.normal(ks_b, (big_b, state_dim), jnp.float32)
    action_b = jax.random.normal(ka_b, (big_b, action_dim), jnp.float32)
    kp12 = prepare_params([params1, params2], state_dim)
    out_b = jax.block_until_ready(soft_q_forward(state_b, action_b, kp12))
    assert out_b.shape == (big_b, 2), out_b.shape
    ref_b1 = soft_q_reference(state_b, action_b, params1)
    ref_b2 = soft_q_reference(state_b, action_b, params2)
    assert jnp.allclose(out_b[:, :1], ref_b1, atol=1e-4, rtol=1e-4)
    assert jnp.allclose(out_b[:, 1:], ref_b2, atol=1e-4, rtol=1e-4)

    # bf16 weights + bf16 input DMA (recommended on v6e/v7x, safe on v5e); looser tol.
    kp1_bf16 = prepare_params([params1], state_dim, weight_dtype=jnp.bfloat16)
    out_bf16 = jax.block_until_ready(soft_q_forward(state, action, kp1_bf16))
    assert out_bf16.shape == (batch, 1)
    assert jnp.allclose(out_bf16, ref, atol=5e-2, rtol=5e-2)

    print("KERNEL_OK")
</pallas_src>

<mosaic_0001>
module attributes {stable_mosaic.version = 11 : i64} {
  func.func @soft_q_kernel(%arg0: i32, %arg1: memref<2x8xf32, #tpu.memory_space<vmem>>, %arg2: memref<2x4xf32, #tpu.memory_space<vmem>>, %arg3: memref<8x128xf32, #tpu.memory_space<vmem>>, %arg4: memref<4x128xf32, #tpu.memory_space<vmem>>, %arg5: memref<1x128xf32, #tpu.memory_space<vmem>>, %arg6: memref<128x128xf32, #tpu.memory_space<vmem>>, %arg7: memref<1x128xf32, #tpu.memory_space<vmem>>, %arg8: memref<1x128xf32, #tpu.memory_space<vmem>>, %arg9: memref<1xf32, #tpu.memory_space<smem>>, %arg10: memref<1x2xf32, #tpu.memory_space<vmem>>) attributes {dimension_semantics = [#tpu.dimension_semantics<parallel>], iteration_bounds = array<i64: 1>, scalar_prefetch = 0 : i64, scratch_operands = 0 : i64, tpu.core_type = #tpu.core_type<tc>, window_params = [{transform_indices = @transform_0, window_bounds = array<i64: 2, 8>}, {transform_indices = @transform_1, window_bounds = array<i64: 2, 4>}, {pipeline_mode = #tpu.pipeline_mode<synchronous>, transform_indices = @transform_2, window_bounds = array<i64: 8, 128>}, {pipeline_mode = #tpu.pipeline_mode<synchronous>, transform_indices = @transform_3, window_bounds = array<i64: 4, 128>}, {pipeline_mode = #tpu.pipeline_mode<synchronous>, transform_indices = @transform_4, window_bounds = array<i64: 1, 128>}, {pipeline_mode = #tpu.pipeline_mode<synchronous>, transform_indices = @transform_5, window_bounds = array<i64: 128, 128>}, {pipeline_mode = #tpu.pipeline_mode<synchronous>, transform_indices = @transform_6, window_bounds = array<i64: 1, 128>}, {pipeline_mode = #tpu.pipeline_mode<synchronous>, transform_indices = @transform_7, window_bounds = array<i64: 1, 128>}, {transform_indices = @transform_8, window_bounds = array<i64: 1>}, {transform_indices = @transform_9, window_bounds = array<i64: 1, 2>}]} {
    %c0 = arith.constant 0 : index
    %c0_0 = arith.constant 0 : index
    %0 = vector.load %arg3[%c0, %c0_0] : memref<8x128xf32, #tpu.memory_space<vmem>>, vector<8x128xf32>
    %c0_1 = arith.constant 0 : index
    %c0_2 = arith.constant 0 : index
    %1 = vector.load %arg4[%c0_1, %c0_2] : memref<4x128xf32, #tpu.memory_space<vmem>>, vector<4x128xf32>
    %c0_3 = arith.constant 0 : index
    %c0_4 = arith.constant 0 : index
    %2 = vector.load %arg1[%c0_3, %c0_4] : memref<2x8xf32, #tpu.memory_space<vmem>>, vector<2x8xf32>
    %cst = arith.constant dense<0.000000e+00> : vector<2x128xf32>
    %3 = tpu.matmul %2, %0, %cst {dimension_numbers = #tpu.dot_dimension_numbers<[1], [0], [0], [1], [0, 0, 1, 1], [], []>} : vector<2x8xf32>, vector<8x128xf32>, vector<2x128xf32> -> vector<2x128xf32>
    %c0_5 = arith.constant 0 : index
    %c0_6 = arith.constant 0 : index
    %4 = vector.load %arg2[%c0_5, %c0_6] : memref<2x4xf32, #tpu.memory_space<vmem>>, vector<2x4xf32>
    %cst_7 = arith.constant dense<0.000000e+00> : vector<2x128xf32>
    %5 = tpu.matmul %4, %1, %cst_7 {dimension_numbers = #tpu.dot_dimension_numbers<[1], [0], [0], [1], [0, 0, 1, 1], [], []>} : vector<2x4xf32>, vector<4x128xf32>, vector<2x128xf32> -> vector<2x128xf32>
    %6 = arith.addf %3, %5 : vector<2x128xf32>
    %c0_8 = arith.constant 0 : index
    %c0_9 = arith.constant 0 : index
    %7 = vector.load %arg5[%c0_8, %c0_9] : memref<1x128xf32, #tpu.memory_space<vmem>>, vector<1x128xf32>
    %8 = vector.broadcast %7 : vector<1x128xf32> to vector<2x128xf32>
    %9 = arith.addf %6, %8 : vector<2x128xf32>
    %cst_10 = arith.constant 0.000000e+00 : f32
    %10 = vector.broadcast %cst_10 : f32 to vector<2x128xf32>
    %11 = arith.maximumf %9, %10 : vector<2x128xf32>
    %c0_11 = arith.constant 0 : index
    %c0_12 = arith.constant 0 : index
    %12 = vector.load %arg6[%c0_11, %c0_12] : memref<128x128xf32, #tpu.memory_space<vmem>>, vector<128x128xf32>
    %cst_13 = arith.constant dense<0.000000e+00> : vector<2x128xf32>
    %13 = tpu.matmul %11, %12, %cst_13 {dimension_numbers = #tpu.dot_dimension_numbers<[1], [0], [0], [1], [0, 0, 1, 1], [], []>} : vector<2x128xf32>, vector<128x128xf32>, vector<2x128xf32> -> vector<2x128xf32>
    %c0_14 = arith.constant 0 : index
    %c0_15 = arith.constant 0 : index
    %14 = vector.load %arg7[%c0_14, %c0_15] : memref<1x128xf32, #tpu.memory_space<vmem>>, vector<1x128xf32>
    %15 = vector.broadcast %14 : vector<1x128xf32> to vector<2x128xf32>
    %16 = arith.addf %13, %15 : vector<2x128xf32>
    %cst_16 = arith.constant 0.000000e+00 : f32
    %17 = vector.broadcast %cst_16 : f32 to vector<2x128xf32>
    %18 = arith.maximumf %16, %17 : vector<2x128xf32>
    %c0_17 = arith.constant 0 : index
    %c0_18 = arith.constant 0 : index
    %19 = vector.load %arg8[%c0_17, %c0_18] : memref<1x128xf32, #tpu.memory_space<vmem>>, vector<1x128xf32>
    %20 = vector.broadcast %19 : vector<1x128xf32> to vector<2x128xf32>
    %21 = arith.mulf %18, %20 : vector<2x128xf32>
    %cst_19 = arith.constant dense<0.000000e+00> : vector<2xf32>
    %22 = vector.multi_reduction <add>, %21, %cst_19 [1] : vector<2x128xf32> to vector<2xf32>
    %c0_20 = arith.constant 0 : index
    %23 = memref.load %arg9[%c0_20] : memref<1xf32, #tpu.memory_space<smem>>
    %24 = vector.broadcast %23 : f32 to vector<2xf32>
    %25 = arith.addf %22, %24 : vector<2xf32>
    %26 = vector.shape_cast %25 : vector<2xf32> to vector<1x2xf32>
    %c0_21 = arith.constant 0 : index
    %c0_22 = arith.constant 0 : index
    %27 = vector.load %arg10[%c0_21, %c0_22] : memref<1x2xf32, #tpu.memory_space<vmem>>, vector<1x2xf32>
    tpu.vector_store %arg10[%c0_21, %c0_22], %26 {strides = array<i32>} : memref<1x2xf32, #tpu.memory_space<vmem>>, vector<1x2xf32>,
    return
  }
  func.func @transform_0(%arg0: i32) -> (i32, i32) {
    %c0_i32 = arith.constant 0 : i32
    %c0_i32_0 = arith.constant 0 : i32
    return %arg0, %c0_i32 : i32, i32
  }
  func.func @transform_1(%arg0: i32) -> (i32, i32) {
    %c0_i32 = arith.constant 0 : i32
    %c0_i32_0 = arith.constant 0 : i32
    return %arg0, %c0_i32 : i32, i32
  }
  func.func @transform_2(%arg0: i32) -> (i32, i32) {
    %c0_i32 = arith.constant 0 : i32
    %c0_i32_0 = arith.constant 0 : i32
    %c0_i32_1 = arith.constant 0 : i32
    return %c0_i32, %c0_i32_0 : i32, i32
  }
  func.func @transform_3(%arg0: i32) -> (i32, i32) {
    %c0_i32 = arith.constant 0 : i32
    %c0_i32_0 = arith.constant 0 : i32
    %c0_i32_1 = arith.constant 0 : i32
    return %c0_i32, %c0_i32_0 : i32, i32
  }
  func.func @transform_4(%arg0: i32) -> (i32, i32) {
    %c0_i32 = arith.constant 0 : i32
    %c0_i32_0 = arith.constant 0 : i32
    %c0_i32_1 = arith.constant 0 : i32
    return %c0_i32, %c0_i32_0 : i32, i32
  }
  func.func @transform_5(%arg0: i32) -> (i32, i32) {
    %c0_i32 = arith.constant 0 : i32
    %c0_i32_0 = arith.constant 0 : i32
    %c0_i32_1 = arith.constant 0 : i32
    return %c0_i32, %c0_i32_0 : i32, i32
  }
  func.func @transform_6(%arg0: i32) -> (i32, i32) {
    %c0_i32 = arith.constant 0 : i32
    %c0_i32_0 = arith.constant 0 : i32
    %c0_i32_1 = arith.constant 0 : i32
    return %c0_i32, %c0_i32_0 : i32, i32
  }
  func.func @transform_7(%arg0: i32) -> (i32, i32) {
    %c0_i32 = arith.constant 0 : i32
    %c0_i32_0 = arith.constant 0 : i32
    %c0_i32_1 = arith.constant 0 : i32
    return %c0_i32, %c0_i32_0 : i32, i32
  }
  func.func @transform_8(%arg0: i32) -> i32 {
    %c0_i32 = arith.constant 0 : i32
    %c0_i32_0 = arith.constant 0 : i32
    return %c0_i32 : i32
  }
  func.func @transform_9(%arg0: i32) -> (i32, i32) {
    %c0_i32 = arith.constant 0 : i32
    %c0_i32_0 = arith.constant 0 : i32
    return %c0_i32, %arg0 : i32, i32
  }
}

</mosaic_0001>

<bundles_post_ra>
// kernel: tpu_custom_call.1
= control target key start
LH: loop header
LB: loop body
LE: loop exit
PB: predicated region body
PF: predicated region fallthrough
CT: control target
= control target key end

     0   :  { %15 = vsyncpa [#allocation4], 0  ;;  %s661_s0 = inlined_call_operand.vmem [shape: f32[2,8], index: 0, kind: input, shape index: {}]   ;;  %s662_s1 = inlined_call_operand.hbm [shape: f32[2,4], index: 1, kind: input, shape index: {}]   ;;  %s663_s2 = inlined_call_operand.vmem [shape: f32[8,128], index: 2, kind: input, shape index: {}]   ;;  %s664_s3 = inlined_call_operand.vmem [shape: f32[4,128], index: 3, kind: input, shape index: {}]   ;;  %s665_s4 = inlined_call_operand.vmem [shape: f32[1,128], index: 4, kind: input, shape index: {}]   ;;  %s666_s5 = inlined_call_operand.hbm [shape: f32[128,128], index: 5, kind: input, shape index: {}]   ;;  %s667_s6 = inlined_call_operand.vmem [shape: f32[1,128], index: 6, kind: input, shape index: {}]   ;;  %s668_s7 = inlined_call_operand.vmem [shape: f32[1,128], index: 7, kind: input, shape index: {}]   ;;  %s669_s8 = inlined_call_operand.<no memory space> [shape: f32[1], index: 8, kind: input, shape index: {}]   ;;  %s670_s9 = inlined_call_operand.hbm [shape: f32[1,2], index: 9, kind: output, shape index: {}]  }
   0x1   :  { %16 = vsyncpa [#allocation7], 0 }
   0x2   :  { %17 = vsyncpa [#allocation5], 0  ;;  %s536_s30 = smov [#allocation3]   ;;  %s537_s11 = smov [#allocation6]  }
   0x3   :  { %s26_s10 = sshll.u32 %s536_s30, 4  ;;  %s41_s12 = sshll.u32 %s537_s11, 4  ;;  %s27_s10 = int_to_ptr.vmem [resolvable:$true] %s26_s10  ;;  %s594_s12 = int_to_ptr.vmem [resolvable:$true] %s41_s12 }
   0x4   :  { %s464_s15 = scalar_lea.hbm %s662_s1, 32 }
   0x5   :  { %p465_p0 = scmp.ne.s32.totalorder %s662_s1, %s464_s15  ;;  %p468_p1 = scmp.lt.u32.totalorder %s464_s15, %s662_s1 }
   0x7   :  { %p470_p2 = pnand %p468_p1, %p465_p0 }
   0x9   :  { %473 = shalt.err (!%p470_p2)
}
   0xa   :  { %s474_s20 = scalar_lea.vmem %s27_s10, 32  ;;  %p479_p4 = scmp.lt.s32.totalorder %s27_s10, %s27_s10 }
   0xb   :  { %p475_p3 = scmp.ne.s32.totalorder %s27_s10, %s474_s20  ;;  %p480_p5 = scmp.lt.s32.totalorder %s474_s20, %s474_s20 }
   0xd   :  { %p481_p6 = por %p480_p5, %p479_p4 }
   0xf   :  { %p482_p7 = pnand %p481_p6, %p475_p3 }
  0x11   :  { %485 = shalt.err (!%p482_p7)
}
  0x12   :  { %29 = dma.hbm_to_vmem [thread:$0]  %s662_s1, 32, %s27_s10, [#allocation4]  }
  0x13   :  { %s486_s25 = scalar_lea.hbm %s666_s5, 2048 }
  0x14   :  { %p487_p8 = scmp.ne.s32.totalorder %s666_s5, %s486_s25  ;;  %p490_p9 = scmp.lt.u32.totalorder %s486_s25, %s666_s5 }
  0x16   :  { %p492_p10 = pnand %p490_p9, %p487_p8 }
  0x18   :  { %495 = shalt.err (!%p492_p10)
}
  0x19   :  { %s496_s30 = scalar_lea.vmem %s594_s12, 2048  ;;  %p501_p12 = scmp.lt.s32.totalorder %s594_s12, %s594_s12 }
  0x1a   :  { %p497_p11 = scmp.ne.s32.totalorder %s594_s12, %s496_s30  ;;  %p502_p13 = scmp.lt.s32.totalorder %s496_s30, %s496_s30 }
  0x1c   :  { %p503_p0 = por %p502_p13, %p501_p12 }
  0x1e   :  { %p504_p1 = pnand %p503_p0, %p497_p11 }
  0x20   :  { %507 = shalt.err (!%p504_p1)
}
  0x21   :  { %s538_s1 = smov 128   ;;  %s539_s10 = smov 8  }
  0x22   :  { %47 = dma.hbm_to_vmem [thread:$0]  %s666_s5, 2048, %s594_s12, [#allocation7], %s538_s1, %s538_s1, %s539_s10  }
  0x23   :  { %530 = dma.done.wait [#allocation4], 32  }
  0x24   :  { %531 = vsyncadd [#allocation4], 4294967264 }
  0x25   :  { %532 = dma.done.wait [#allocation7], 2048  }
  0x26   :  { %533 = vsyncadd [#allocation7], 4294965248  ;;  %v540_v0 = vmov 0.0   ;;  %vm541_vm0 = vmmov 0   ;;  %v542_v1 = vmov 0.0|0.0   ;;  %vm68_vm1 = vcmask 1043456  }
  0x27   :  { %387 = vmatprep.subr.mxu1 %v540_v0  ;;  %389 = vmatprep.mubr.msk.f32.mxu1 %vm541_vm0, %v540_v0  ;;  %vm64_vm2 = vcmask 31744   ;;  %v61_v2 = vld [vmem:[%s664_s3] sm:$0xf]  ;;  %v226_v6 = vld [vmem:[#allocation6 + $0x8] sm:$0xff]  ;;  %v227_v8 = vld [vmem:[#allocation6 + $0x10] sm:$0xff]  ;;  %vm142_vm3 = vcmask 64512   ;;  %v335_v46 = vlaneseq  ;;  %v332_v49 = vstv %s669_s8 }
  0x28   :  { %432 = vmatprep.subr.bf16.mxu0 %v542_v1  ;;  %429 = vmatprep.mubr.msk.f32.mxu0 %vm541_vm0, %v540_v0  ;;  %v63_v3 = vld [vmem:[#allocation3] sm:$0x3]  ;;  %v225_v5 = vld [vmem:[#allocation6] sm:$0xff]  ;;  %v230_v13 = vld [vmem:[#allocation6 + $0x28] sm:$0xff]  ;;  %vm327_vm4 = vcmask 1041408   ;;  %vm342_vm5 = vcmask 8192  }
  0x29   :  { %v60_v4 = vld [vmem:[%s663_s2] sm:$0xff]  ;;  %388 = vmatpush3.msk.msra.mxu1 %vm68_vm1, %v61_v2  ;;  %v433_v7 = vpack.c.bf16 %v226_v6, %v225_v5  ;;  %v231_v15 = vld [vmem:[#allocation6 + $0x30] sm:$0xff]  ;;  %v234_v19 = vld [vmem:[#allocation6 + $0x48] sm:$0xff]  ;;  %v336_v47 = vand.u32 127, %v335_v46  ;;  %v338_v48 = vshrl.u32 %v335_v46, 7 }
  0x2a   :  { %390 = vmatmul.mubr.msk.f32.vlgmr.msra.gmra.mrb[0].mxu1 %vm64_vm2, %v63_v3  ;;  %392 = vmatprep.subr.mxu1 %v540_v0  ;;  %v228_v9 = vld [vmem:[#allocation6 + $0x18] sm:$0xff]  ;;  %v229_v12 = vld [vmem:[#allocation6 + $0x20] sm:$0xff]  ;;  %v235_v21 = vld [vmem:[#allocation6 + $0x50] sm:$0xff] }
  0x2b   :  { %393 = vmatpush3.msra.mxu1 %v60_v4  ;;  %394 = vmatprep.mubr.msk.f32.mxu1 %vm541_vm0, %v540_v0  ;;  %v62_v10 = vld [vmem:[%s661_s0] sm:$0x3]  ;;  %v436_v11 = vpack.c.bf16 %v228_v9, %v227_v8  ;;  %v439_v14 = vpack.c.bf16 %v230_v13, %v229_v12  ;;  %v233_v18 = vld [vmem:[#allocation6 + $0x40] sm:$0xff]  ;;  %v238_v25 = vld [vmem:[#allocation6 + $0x68] sm:$0xff]  ;;  %v339_v50 = vsub.s32 %v336_v47, %v338_v48 }
  0x2c   :  { %434 = vmatpush3.bf16.msra.mxu0 %v433_v7  ;;  %v232_v16 = vld [vmem:[#allocation6 + $0x38] sm:$0xff]  ;;  %v445_v20 = vpack.c.bf16 %v234_v19, %v233_v18  ;;  %v237_v24 = vld [vmem:[#allocation6 + $0x60] sm:$0xff]  ;;  %v239_v27 = vld [vmem:[#allocation6 + $0x70] sm:$0xff] }
  0x2d   :  { %435 = vmatprep.subr.bf16.mxu0 %v542_v1  ;;  %v442_v17 = vpack.c.bf16 %v232_v16, %v231_v15  ;;  %v236_v22 = vld [vmem:[#allocation6 + $0x58] sm:$0xff]  ;;  %v451_v26 = vpack.c.bf16 %v238_v25, %v237_v24 }
  0x2e   :  { %395 = vmatmul.mubr.msk.f32.vlgmr.msra.gmra.mrb[2].mxu1 %vm142_vm3, %v62_v10  ;;  %v448_v23 = vpack.c.bf16 %v236_v22, %v235_v21  ;;  %v240_v28 = vld [vmem:[#allocation6 + $0x78] sm:$0xff] }
  0x2f   :  { %v454_v29 = vpack.c.bf16 %v240_v28, %v239_v27  ;;  %v363_v33 = vld [vmem:[%s665_s4] ss:$0 sm:$0xff] }
  0x30   :  { %437 = vmatpush3.bf16.msra.mxu0 %v436_v11  ;;  %v364_v38 = vld [vmem:[%s667_s6] ss:$0 sm:$0xff]  ;;  %s543_s6 = smov [#allocation8]  }
  0x31   :  { %438 = vmatprep.subr.bf16.mxu0 %v542_v1  ;;  %v365_v42 = vld [vmem:[%s668_s7] ss:$0 sm:$0xff]  ;;  %s350_s22 = sshll.u32 %s543_s6, 4  ;;  %s351_s22 = int_to_ptr.vmem [resolvable:$true] %s350_s22 }
  0x32   :  { %s508_s7 = scalar_lea.vmem %s351_s22, 16  ;;  %s512_s23 = scalar_lea.vmem %s351_s22, 32 }
  0x33   :  { %p509_p2 = scmp.ne.s32.totalorder %s351_s22, %s508_s7  ;;  %p513_p3 = scmp.lt.s32.totalorder %s351_s22, %s351_s22 }
  0x34   :  { %440 = vmatpush3.bf16.msra.mxu0 %v439_v14  ;;  %p514_p4 = scmp.lt.s32.totalorder %s512_s23, %s508_s7 }
  0x35   :  { %441 = vmatprep.subr.bf16.mxu0 %v542_v1 }
  0x36   :  { %p515_p5 = por %p514_p4, %p513_p3 }
  0x38   :  { %443 = vmatpush3.bf16.msra.mxu0 %v442_v17  ;;  %p516_p6 = pnand %p515_p5, %p509_p2 }
  0x39   :  { %444 = vmatprep.subr.bf16.mxu0 %v542_v1 }
  0x3c   :  { %446 = vmatpush3.bf16.msra.mxu0 %v445_v20 }
  0x3d   :  { %447 = vmatprep.subr.bf16.mxu0 %v542_v1 }
  0x40   :  { %449 = vmatpush3.bf16.msra.mxu0 %v448_v23 }
  0x41   :  { %450 = vmatprep.subr.bf16.mxu0 %v542_v1 }
  0x44   :  { %452 = vmatpush3.bf16.msra.mxu0 %v451_v26 }
  0x45   :  { %453 = vmatprep.subr.bf16.mxu0 %v542_v1 }
  0x48   :  { %455 = vmatpush3.bf16.msra.mxu0 %v454_v29 }
  0xfd   :  { %v138_v30 = vpop.f32.mrb[0].mxu1 }
  0xfe   :  { %v391_v31 = vpop.f32.mrb[1].mxu1 }
 0x101   :  { %v212_v32 = vpop.f32.mrb[2].mxu1 }
 0x102   :  { %v213_v34 = vadd.f32 %v212_v32, %v138_v30  ;;  %v396_v35 = vpop.f32.mrb[3].mxu1 }
 0x104   :  { %v223_v36 = vadd.f32 %v363_v33, %v213_v34 }
 0x106   :  { %v224_v37 = vmax.f32 %v223_v36, 0.0 }
 0x108   :  { %430 = vmatmul.mubr.f32.vlgmr.msra.gmra.mrb[0].mxu0 %v224_v37 }
 0x1db   :  { %v314_v39 = vpop.f32.mrb[0].mxu0 }
 0x1dc   :  { %v315_v40 = vadd.f32 %v364_v38, %v314_v39  ;;  %v431_v41 = vpop.f32.mrb[1].mxu0 }
 0x1de   :  { %v318_v43 = vmax.f32 %v315_v40, 0.0 }
 0x1e0   :  { %v326_v44 = vmul.f32 %v365_v42, %v318_v43 }
 0x1e2   :  { %v328_v45 = vsel %vm327_vm4, %v326_v44, 0.0 }
 0x1e3   :  { %329 = vadd.xlane.f32.xlu0 %v328_v45 }
 0x270   :  { %v330_v51 = vpop.xlane.xlu0 %329 }
 0x271   :  { %v333_v52 = vadd.f32 %v332_v49, %v330_v51 }
 0x273   :  { %v340_v53 = vrot.slane %v333_v52, %v339_v50 }
 0x275   :  { %343 = vst.msk [vmem:[#allocation8] sm:$0x1] %vm342_vm5, %v340_v53 }
 0x276   :  { %519 = shalt.err (!%p516_p6)
}
 0x277   :  { %s520_s8 = scalar_lea.hbm %s670_s9, 16 }
 0x278   :  { %p521_p7 = scmp.ne.s32.totalorder %s670_s9, %s520_s8  ;;  %p524_p8 = scmp.lt.u32.totalorder %s520_s8, %s670_s9 }
 0x27a   :  { %p526_p9 = pnand %p524_p8, %p521_p7 }
 0x27c   :  { %529 = shalt.err (!%p526_p9)
}
 0x27d   :  { %353 = dma.vmem_to_hbm [thread:$0]  %s351_s22, 16, %s670_s9, [#allocation5]  }
 0x27e   :  { %534 = dma.done.wait [#allocation5], 16  }
 0x27f   :  { %535 = vsyncadd [#allocation5], 4294967280 }
 0x280   :  { %357 = vsyncpa [#allocation4], 1 }
 0x281   :  { %358 = vsyncpa [#allocation7], 1 }
 0x282   :  { %359 = vsyncpa [#allocation5], 1 }

</bundles_post_ra>
